<compile_context>
chip_gen: v7x
topology: tpu7x:2x2x1
jax: 0.10.0
libtpu: 0.0.40
codegen_flags: <defaults>
</compile_context>

<pallas_src>
import functools
import math

import jax
import jax.numpy as jnp
from jax.experimental import pallas as pl
from jax.experimental.pallas import tpu as pltpu

LOWER, UPPER = -0.1, 1.1
ENCODER_ENTROPY_COEFF = 0.1


def _round_up(n, m):
    return ((n + m - 1) // m) * m


def _pad_to(a, shape):
    pads = [(0, t - s) for s, t in zip(a.shape, shape)]
    if all(p == (0, 0) for p in pads):
        return a
    return jnp.pad(a, pads)


def _auto_tile_b(batch, max_tile=512):
    # Largest batch tile (capped) that still leaves >=2 grid steps when the
    # batch allows it (v7x megacore), rounded to a multiple of 16 for bf16
    # sublane packing.
    tile = max(16, min(max_tile, _round_up(pl.cdiv(batch, 2), 16)))
    return min(tile, _round_up(batch, 16))


def _vmem_limit_bytes():
    # ~75% of physical VMEM, capped at 100 MiB (96 MiB on v5e/v6e, 48 MiB v7x).
    try:
        cap = pltpu.get_tpu_info().vmem_capacity_bytes
    except Exception:
        cap = 64 * 1024 * 1024
    return min(int(cap * 3 // 4), 100 * 1024 * 1024)


def bitvector_hc_kernel(x_ref, wenc_ref, benc_ref, dinp_ref, wdec_ref, wdi_ref,
                        bdec_ref, lbl_ref,
                        scores_ref, z_ref, dec_ref, stats_ref,
                        *, batch_size, tile_b, z_dim, c_dim):
    tile = pl.program_id(0)

    # ---------------- encoder: linear -> scores, hard-concrete gate ----------
    x = x_ref[...]                                                    # [TB, D_in] bf16
    scores = (jnp.dot(x, wenc_ref[...], preferred_element_type=jnp.float32)
              + benc_ref[...])                                        # [TB, Zp] f32
    scores_ref[...] = scores                                          # lane-dense store

    tb, zp = scores.shape
    zcol = jax.lax.broadcasted_iota(jnp.int32, (tb, zp), 1)
    z_valid = zcol < z_dim                                            # mask padded Z cols

    p = jax.nn.sigmoid(scores)                                        # [TB, Zp]
    z = jnp.clip(p * (UPPER - LOWER) + LOWER, 0.0, 1.0)               # hard gate
    z_ref[...] = z

    # exact Bernoulli entropy in softplus form: H = softplus(s) - s * sigmoid(s)
    ent = jax.nn.softplus(scores) - scores * p
    ent_row = jnp.sum(jnp.where(z_valid, ent, 0.0), axis=-1, keepdims=True)

    # ---------------- decoder: deterministic linear over (z, decoder_input) --
    logits = jnp.dot(z.astype(jnp.bfloat16), wdec_ref[...],
                     preferred_element_type=jnp.float32)
    logits = logits + jnp.dot(dinp_ref[...], wdi_ref[...],
                              preferred_element_type=jnp.float32)
    logits = logits + bdec_ref[...]                                   # [TB, Cp]
    dec_ref[...] = logits                                             # lane-dense store

    # ---------------- softmax cross-entropy with integer labels --------------
    cp = logits.shape[1]
    col = jax.lax.broadcasted_iota(jnp.int32, (tb, cp), 1)            # class ids
    c_valid = col < c_dim
    logits_m = jnp.where(c_valid, logits, jnp.float32(-1e30))         # mask padded classes
    lbl = lbl_ref[...]                                                # [TB, 1] int32

    m = jnp.max(logits_m, axis=-1, keepdims=True)
    lse = m + jnp.log(jnp.sum(jnp.exp(logits_m - m), axis=-1, keepdims=True))
    label_logit = jnp.sum(jnp.where(col == lbl, logits_m, 0.0),
                          axis=-1, keepdims=True)
    nll = lse - label_logit                                           # [TB, 1]

    # accuracy: argmax over real classes (first-max tie break, like torch/jnp)
    pred = jnp.min(jnp.where(logits_m == m, col, cp), axis=-1, keepdims=True)
    correct = (pred == lbl).astype(jnp.float32)                       # [TB, 1]

    # ---------------- in-kernel reduction to per-tile partial sums -----------
    row = tile * tile_b + jax.lax.broadcasted_iota(jnp.int32, (tb, 1), 0)
    valid = row < batch_size                                          # mask pad rows
    loss_sum = jnp.sum(jnp.where(valid, nll, 0.0))
    ent_sum = jnp.sum(jnp.where(valid, ent_row, 0.0))
    acc_sum = jnp.sum(jnp.where(valid, correct, 0.0))

    # lane-dense (1,128) stats block: lane0=loss_sum, lane1=ent_sum, lane2=acc_sum
    lane = jax.lax.broadcasted_iota(jnp.int32, (1, 128), 1)
    stats = (jnp.where(lane == 0, loss_sum, 0.0)
             + jnp.where(lane == 1, ent_sum, 0.0)
             + jnp.where(lane == 2, acc_sum, 0.0))
    stats_ref[...] = stats[None]


def bitvector_hardconcrete_forward(encoder_input, decoder_input, labels, params,
                                   *, tile_b=None):
    B, D_in = encoder_input.shape
    D_dec = decoder_input.shape[1]
    Z = params["W_enc"].shape[1]
    C = params["W_dec"].shape[1]

    # Lane-dense aux writebacks: pad Z / C to multiples of 128 (no-op if already).
    Zp = _round_up(Z, 128)
    Cp = _round_up(C, 128)

    if tile_b is None:
        tile_b = _auto_tile_b(B)
    num_tiles = pl.cdiv(B, tile_b)

    # bf16 matmul operands (MXU-native dtype, halves HBM read + weight VMEM).
    x_bf = encoder_input.astype(jnp.bfloat16)
    dinp_bf = decoder_input.astype(jnp.bfloat16)
    w_enc = _pad_to(params["W_enc"].astype(jnp.bfloat16), (D_in, Zp))
    b_enc = _pad_to(params["b_enc"].astype(jnp.float32).reshape(1, Z), (1, Zp))
    w_dec = _pad_to(params["W_dec"].astype(jnp.bfloat16), (Zp, Cp))
    w_di = _pad_to(params["W_di"].astype(jnp.bfloat16), (D_dec, Cp))
    b_dec = _pad_to(params["b_dec"].astype(jnp.float32).reshape(1, C), (1, Cp))

    labels_i32 = labels.astype(jnp.int32).reshape(B, 1)   # no [B,C] one-hot

    kernel = functools.partial(bitvector_hc_kernel, batch_size=B, tile_b=tile_b,
                               z_dim=Z, c_dim=C)

    in_specs = [
        pl.BlockSpec((tile_b, D_in), lambda i: (i, 0)),    # encoder_input tile
        pl.BlockSpec((D_in, Zp), lambda i: (0, 0)),        # W_enc  (resident)
        pl.BlockSpec((1, Zp), lambda i: (0, 0)),           # b_enc  (resident)
        pl.BlockSpec((tile_b, D_dec), lambda i: (i, 0)),   # decoder_input tile
        pl.BlockSpec((Zp, Cp), lambda i: (0, 0)),          # W_dec  (resident)
        pl.BlockSpec((D_dec, Cp), lambda i: (0, 0)),       # W_di   (resident)
        pl.BlockSpec((1, Cp), lambda i: (0, 0)),           # b_dec  (resident)
        pl.BlockSpec((tile_b, 1), lambda i: (i, 0)),       # int32 labels tile
    ]
    out_specs = (
        pl.BlockSpec((tile_b, Zp), lambda i: (i, 0)),      # encoder_scores (padded)
        pl.BlockSpec((tile_b, Zp), lambda i: (i, 0)),      # discrete_latent_z (padded)
        pl.BlockSpec((tile_b, Cp), lambda i: (i, 0)),      # decoder_output (padded)
        pl.BlockSpec((1, 1, 128), lambda i: (i, 0, 0)),    # per-tile stats block
    )
    out_shapes = (
        jax.ShapeDtypeStruct((B, Zp), jnp.float32),
        jax.ShapeDtypeStruct((B, Zp), jnp.float32),
        jax.ShapeDtypeStruct((B, Cp), jnp.float32),
        jax.ShapeDtypeStruct((num_tiles, 1, 128), jnp.float32),
    )

    scores_p, z_p, dec_p, stats = pl.pallas_call(
        kernel,
        grid=(num_tiles,),
        in_specs=in_specs,
        out_specs=out_specs,
        out_shape=out_shapes,
        compiler_params=pltpu.CompilerParams(
            dimension_semantics=("parallel",),             # megacore shard on v7x
            vmem_limit_bytes=_vmem_limit_bytes()),         # generation-specific
    )(x_bf, w_enc, b_enc, dinp_bf, w_dec, w_di, b_dec, labels_i32)

    # slice padded lane dims back to the module's true sizes
    scores = scores_p[:, :Z]
    z = z_p[:, :Z]
    dec_out = dec_p[:, :C]

    # per-tile partial sums -> batch means (tiny [num_tiles, 3] XLA reduce)
    totals = jnp.sum(stats[:, 0, :3], axis=0)
    mean_loss = totals[0] / B
    mean_entropy = totals[1] / B
    mean_acc = totals[2] / B

    # --- BitVectorHardConcrete.forward glue (matches the PyTorch module) ---
    entropy_loss = -(mean_entropy * ENCODER_ENTROPY_COEFF)
    full_loss = mean_loss + entropy_loss

    logs = {
        "acc": mean_acc,
        "loss": mean_loss,
        "encoder_entropy": mean_entropy,
    }
    aux = {
        "encoder_scores": scores,
        "discrete_latent_z": z,
        # argmax dropped from the kernel (saves a [B, Z] HBM write stream);
        # recoverable as (scores > 0) -- cheap XLA elementwise, DCE'd if unused.
        "argmax": (scores > 0.0).astype(jnp.float32),
        "decoder_output": dec_out,
    }
    return {"loss": full_loss, "log": logs, "aux": aux}


if __name__ == "__main__":
    B, D_in, D_dec, Z, C = 32, 32, 16, 16, 8

    key = jax.random.PRNGKey(0)
    k_x, k_d, k_y, k_we, k_be, k_wd, k_wi, k_bd = jax.random.split(key, 8)

    encoder_input = jax.random.normal(k_x, (B, D_in), dtype=jnp.float32)
    decoder_input = jax.random.normal(k_d, (B, D_dec), dtype=jnp.float32)
    labels = jax.random.randint(k_y, (B,), 0, C)

    params = {
        "W_enc": jax.random.normal(k_we, (D_in, Z), dtype=jnp.float32)
                 / math.sqrt(D_in),
        "b_enc": 0.1 * jax.random.normal(k_be, (1, Z), dtype=jnp.float32),
        "W_dec": jax.random.normal(k_wd, (Z, C), dtype=jnp.float32)
                 / math.sqrt(Z),
        "W_di": jax.random.normal(k_wi, (D_dec, C), dtype=jnp.float32)
                / math.sqrt(D_dec),
        "b_dec": 0.1 * jax.random.normal(k_bd, (1, C), dtype=jnp.float32),
    }

    out = bitvector_hardconcrete_forward(encoder_input, decoder_input,
                                         labels, params)
    jax.block_until_ready(out)

    assert out["loss"].shape == ()
    assert out["aux"]["encoder_scores"].shape == (B, Z)
    assert out["aux"]["discrete_latent_z"].shape == (B, Z)
    assert out["aux"]["decoder_output"].shape == (B, C)
    assert out["log"]["acc"].shape == ()
    assert bool(jnp.isfinite(out["loss"]))
    print("KERNEL_OK")
</pallas_src>

<mosaic_0001>
module attributes {stable_mosaic.version = 11 : i64} {
  func.func @bitvector_hc_kernel(%arg0: i32, %arg1: memref<16x32xbf16, #tpu.memory_space<vmem>>, %arg2: memref<32x128xbf16, #tpu.memory_space<vmem>>, %arg3: memref<1x128xf32, #tpu.memory_space<vmem>>, %arg4: memref<16x16xbf16, #tpu.memory_space<vmem>>, %arg5: memref<128x128xbf16, #tpu.memory_space<vmem>>, %arg6: memref<16x128xbf16, #tpu.memory_space<vmem>>, %arg7: memref<1x128xf32, #tpu.memory_space<vmem>>, %arg8: memref<16x1xi32, #tpu.memory_space<vmem>>, %arg9: memref<16x128xf32, #tpu.memory_space<vmem>>, %arg10: memref<16x128xf32, #tpu.memory_space<vmem>>, %arg11: memref<16x128xf32, #tpu.memory_space<vmem>>, %arg12: memref<1x1x128xf32, #tpu.memory_space<vmem>>) attributes {dimension_semantics = [#tpu.dimension_semantics<parallel>], iteration_bounds = array<i64: 2>, scalar_prefetch = 0 : i64, scratch_operands = 0 : i64, tpu.core_type = #tpu.core_type<tc>, window_params = [{transform_indices = @transform_0, window_bounds = array<i64: 16, 32>}, {pipeline_mode = #tpu.pipeline_mode<synchronous>, transform_indices = @transform_1, window_bounds = array<i64: 32, 128>}, {pipeline_mode = #tpu.pipeline_mode<synchronous>, transform_indices = @transform_2, window_bounds = array<i64: 1, 128>}, {transform_indices = @transform_3, window_bounds = array<i64: 16, 16>}, {pipeline_mode = #tpu.pipeline_mode<synchronous>, transform_indices = @transform_4, window_bounds = array<i64: 128, 128>}, {pipeline_mode = #tpu.pipeline_mode<synchronous>, transform_indices = @transform_5, window_bounds = array<i64: 16, 128>}, {pipeline_mode = #tpu.pipeline_mode<synchronous>, transform_indices = @transform_6, window_bounds = array<i64: 1, 128>}, {transform_indices = @transform_7, window_bounds = array<i64: 16, 1>}, {transform_indices = @transform_8, window_bounds = array<i64: 16, 128>}, {transform_indices = @transform_9, window_bounds = array<i64: 16, 128>}, {transform_indices = @transform_10, window_bounds = array<i64: 16, 128>}, {transform_indices = @transform_11, window_bounds = array<i64: 1, 1, 128>}]} {
    %c0 = arith.constant 0 : index
    %c0_0 = arith.constant 0 : index
    %0 = vector.load %arg1[%c0, %c0_0] : memref<16x32xbf16, #tpu.memory_space<vmem>>, vector<16x32xbf16>
    %c0_1 = arith.constant 0 : index
    %c0_2 = arith.constant 0 : index
    %1 = vector.load %arg2[%c0_1, %c0_2] : memref<32x128xbf16, #tpu.memory_space<vmem>>, vector<32x128xbf16>
    %cst = arith.constant dense<0.000000e+00> : vector<16x128xf32>
    %2 = tpu.matmul %0, %1, %cst {dimension_numbers = #tpu.dot_dimension_numbers<[1], [0], [0], [1], [0, 0, 1, 1], [], []>} : vector<16x32xbf16>, vector<32x128xbf16>, vector<16x128xf32> -> vector<16x128xf32>
    %c0_3 = arith.constant 0 : index
    %c0_4 = arith.constant 0 : index
    %3 = vector.load %arg3[%c0_3, %c0_4] : memref<1x128xf32, #tpu.memory_space<vmem>>, vector<1x128xf32>
    %4 = vector.broadcast %3 : vector<1x128xf32> to vector<16x128xf32>
    %5 = arith.addf %2, %4 : vector<16x128xf32>
    %c0_5 = arith.constant 0 : index
    %c0_6 = arith.constant 0 : index
    %6 = vector.load %arg9[%c0_5, %c0_6] : memref<16x128xf32, #tpu.memory_space<vmem>>, vector<16x128xf32>
    tpu.vector_store %arg9[%c0_5, %c0_6], %5 {strides = array<i32>} : memref<16x128xf32, #tpu.memory_space<vmem>>, vector<16x128xf32>,
    %7 = tpu.iota {dimensions = array<i32: 1>} : vector<16x128xi32>
    %c16_i32 = arith.constant 16 : i32
    %8 = vector.broadcast %c16_i32 : i32 to vector<16x128xi32>
    %9 = arith.cmpi slt, %7, %8 : vector<16x128xi32>
    %10 = arith.negf %5 : vector<16x128xf32>
    %11 = math.exp %10 : vector<16x128xf32>
    %cst_7 = arith.constant 1.000000e+00 : f32
    %12 = vector.broadcast %cst_7 : f32 to vector<16x128xf32>
    %13 = arith.addf %12, %11 : vector<16x128xf32>
    %14 = arith.divf %12, %13 : vector<16x128xf32>
    %cst_8 = arith.constant 1.200000e+00 : f32
    %15 = vector.broadcast %cst_8 : f32 to vector<16x128xf32>
    %16 = arith.mulf %14, %15 : vector<16x128xf32>
    %cst_9 = arith.constant -1.000000e-01 : f32
    %17 = vector.broadcast %cst_9 : f32 to vector<16x128xf32>
    %18 = arith.addf %16, %17 : vector<16x128xf32>
    %cst_10 = arith.constant 0.000000e+00 : f32
    %cst_11 = arith.constant 1.000000e+00 : f32
    %19 = vector.broadcast %cst_10 : f32 to vector<16x128xf32>
    %20 = arith.maximumf %19, %18 : vector<16x128xf32>
    %21 = vector.broadcast %cst_11 : f32 to vector<16x128xf32>
    %22 = arith.minimumf %21, %20 : vector<16x128xf32>
    %c0_12 = arith.constant 0 : index
    %c0_13 = arith.constant 0 : index
    %23 = vector.load %arg10[%c0_12, %c0_13] : memref<16x128xf32, #tpu.memory_space<vmem>>, vector<16x128xf32>
    tpu.vector_store %arg10[%c0_12, %c0_13], %22 {strides = array<i32>} : memref<16x128xf32, #tpu.memory_space<vmem>>, vector<16x128xf32>,
    %cst_14 = arith.constant 0.000000e+00 : f32
    %24 = vector.broadcast %cst_14 : f32 to vector<16x128xf32>
    %25 = arith.maximumf %5, %24 : vector<16x128xf32>
    %26 = vector.broadcast %cst_14 : f32 to vector<16x128xf32>
    %27 = arith.subf %5, %26 : vector<16x128xf32>
    %28 = arith.cmpf one, %27, %27 : vector<16x128xf32>
    %29 = vector.broadcast %cst_14 : f32 to vector<16x128xf32>
    %30 = arith.addf %5, %29 : vector<16x128xf32>
    %31 = math.absf %27 : vector<16x128xf32>
    %cst_15 = arith.constant 0.000000e+00 : f32
    %32 = vector.broadcast %cst_15 : f32 to vector<16x128xf32>
    %33 = arith.subf %32, %31 : vector<16x128xf32>
    %34 = math.exp %33 : vector<16x128xf32>
    %35 = math.log1p %34 : vector<16x128xf32>
    %36 = arith.addf %25, %35 : vector<16x128xf32>
    %37 = arith.select %28, %30, %36 : vector<16x128xi1>, vector<16x128xf32>
    %38 = arith.mulf %5, %14 : vector<16x128xf32>
    %39 = arith.subf %37, %38 : vector<16x128xf32>
    %cst_16 = arith.constant 0.000000e+00 : f32
    %40 = vector.broadcast %cst_16 : f32 to vector<16x128xf32>
    %41 = arith.select %9, %39, %40 : vector<16x128xi1>, vector<16x128xf32>
    %cst_17 = arith.constant dense<0.000000e+00> : vector<16xf32>
    %42 = vector.multi_reduction <add>, %41, %cst_17 [1] : vector<16x128xf32> to vector<16xf32>
    %43 = vector.shape_cast %42 : vector<16xf32> to vector<16x1xf32>
    %44 = arith.truncf %22 : vector<16x128xf32> to vector<16x128xbf16>
    %c0_18 = arith.constant 0 : index
    %c0_19 = arith.constant 0 : index
    %45 = vector.load %arg5[%c0_18, %c0_19] : memref<128x128xbf16, #tpu.memory_space<vmem>>, vector<128x128xbf16>
    %cst_20 = arith.constant dense<0.000000e+00> : vector<16x128xf32>
    %46 = tpu.matmul %44, %45, %cst_20 {dimension_numbers = #tpu.dot_dimension_numbers<[1], [0], [0], [1], [0, 0, 1, 1], [], []>} : vector<16x128xbf16>, vector<128x128xbf16>, vector<16x128xf32> -> vector<16x128xf32>
    %c0_21 = arith.constant 0 : index
    %c0_22 = arith.constant 0 : index
    %47 = vector.load %arg4[%c0_21, %c0_22] : memref<16x16xbf16, #tpu.memory_space<vmem>>, vector<16x16xbf16>
    %c0_23 = arith.constant 0 : index
    %c0_24 = arith.constant 0 : index
    %48 = vector.load %arg6[%c0_23, %c0_24] : memref<16x128xbf16, #tpu.memory_space<vmem>>, vector<16x128xbf16>
    %cst_25 = arith.constant dense<0.000000e+00> : vector<16x128xf32>
    %49 = tpu.matmul %47, %48, %cst_25 {dimension_numbers = #tpu.dot_dimension_numbers<[1], [0], [0], [1], [0, 0, 1, 1], [], []>} : vector<16x16xbf16>, vector<16x128xbf16>, vector<16x128xf32> -> vector<16x128xf32>
    %50 = arith.addf %46, %49 : vector<16x128xf32>
    %c0_26 = arith.constant 0 : index
    %c0_27 = arith.constant 0 : index
    %51 = vector.load %arg7[%c0_26, %c0_27] : memref<1x128xf32, #tpu.memory_space<vmem>>, vector<1x128xf32>
    %52 = vector.broadcast %51 : vector<1x128xf32> to vector<16x128xf32>
    %53 = arith.addf %50, %52 : vector<16x128xf32>
    %c0_28 = arith.constant 0 : index
    %c0_29 = arith.constant 0 : index
    %54 = vector.load %arg11[%c0_28, %c0_29] : memref<16x128xf32, #tpu.memory_space<vmem>>, vector<16x128xf32>
    tpu.vector_store %arg11[%c0_28, %c0_29], %53 {strides = array<i32>} : memref<16x128xf32, #tpu.memory_space<vmem>>, vector<16x128xf32>,
    %55 = tpu.iota {dimensions = array<i32: 1>} : vector<16x128xi32>
    %c8_i32 = arith.constant 8 : i32
    %56 = vector.broadcast %c8_i32 : i32 to vector<16x128xi32>
    %57 = arith.cmpi slt, %55, %56 : vector<16x128xi32>
    %cst_30 = arith.constant -1.000000e+30 : f32
    %58 = vector.broadcast %cst_30 : f32 to vector<16x128xf32>
    %59 = arith.select %57, %53, %58 : vector<16x128xi1>, vector<16x128xf32>
    %c0_31 = arith.constant 0 : index
    %c0_32 = arith.constant 0 : index
    %60 = vector.load %arg8[%c0_31, %c0_32] : memref<16x1xi32, #tpu.memory_space<vmem>>, vector<16x1xi32>
    %cst_33 = arith.constant dense<0xFF800000> : vector<16xf32>
    %61 = vector.multi_reduction <maximumf>, %59, %cst_33 [1] : vector<16x128xf32> to vector<16xf32>
    %62 = vector.shape_cast %61 : vector<16xf32> to vector<16x1xf32>
    %63 = vector.broadcast %62 : vector<16x1xf32> to vector<16x128xf32>
    %64 = arith.subf %59, %63 : vector<16x128xf32>
    %65 = math.exp %64 : vector<16x128xf32>
    %cst_34 = arith.constant dense<0.000000e+00> : vector<16xf32>
    %66 = vector.multi_reduction <add>, %65, %cst_34 [1] : vector<16x128xf32> to vector<16xf32>
    %67 = vector.shape_cast %66 : vector<16xf32> to vector<16x1xf32>
    %68 = math.log %67 : vector<16x1xf32>
    %69 = arith.addf %62, %68 : vector<16x1xf32>
    %70 = vector.broadcast %60 : vector<16x1xi32> to vector<16x128xi32>
    %71 = arith.cmpi eq, %55, %70 : vector<16x128xi32>
    %cst_35 = arith.constant 0.000000e+00 : f32
    %72 = vector.broadcast %cst_35 : f32 to vector<16x128xf32>
    %73 = arith.select %71, %59, %72 : vector<16x128xi1>, vector<16x128xf32>
    %cst_36 = arith.constant dense<0.000000e+00> : vector<16xf32>
    %74 = vector.multi_reduction <add>, %73, %cst_36 [1] : vector<16x128xf32> to vector<16xf32>
    %75 = vector.shape_cast %74 : vector<16xf32> to vector<16x1xf32>
    %76 = arith.subf %69, %75 : vector<16x1xf32>
    %77 = vector.broadcast %62 : vector<16x1xf32> to vector<16x128xf32>
    %78 = arith.cmpf oeq, %59, %77 : vector<16x128xf32>
    %c128_i32 = arith.constant 128 : i32
    %79 = vector.broadcast %c128_i32 : i32 to vector<16x128xi32>
    %80 = arith.select %78, %55, %79 : vector<16x128xi1>, vector<16x128xi32>
    %cst_37 = arith.constant dense<2147483647> : vector<16xi32>
    %81 = vector.multi_reduction <minsi>, %80, %cst_37 [1] : vector<16x128xi32> to vector<16xi32>
    %82 = vector.shape_cast %81 : vector<16xi32> to vector<16x1xi32>
    %83 = arith.cmpi eq, %82, %60 : vector<16x1xi32>
    %84 = arith.extui %83 : vector<16x1xi1> to vector<16x1xi32>
    %85 = arith.sitofp %84 : vector<16x1xi32> to vector<16x1xf32>
    %c16_i32_38 = arith.constant 16 : i32
    %86 = arith.muli %arg0, %c16_i32_38 : i32
    %87 = tpu.iota {dimensions = array<i32: 0>} : vector<16x1xi32>
    %88 = vector.broadcast %86 : i32 to vector<16x1xi32>
    %89 = arith.addi %88, %87 : vector<16x1xi32>
    %c32_i32 = arith.constant 32 : i32
    %90 = vector.broadcast %c32_i32 : i32 to vector<16x1xi32>
    %91 = arith.cmpi slt, %89, %90 : vector<16x1xi32>
    %cst_39 = arith.constant 0.000000e+00 : f32
    %92 = vector.broadcast %cst_39 : f32 to vector<16x1xf32>
    %93 = arith.select %91, %76, %92 : vector<16x1xi1>, vector<16x1xf32>
    %94 = vector.shape_cast %93 : vector<16x1xf32> to vector<1x16x1xf32>
    %cst_40 = arith.constant dense<0.000000e+00> : vector<1xf32>
    %95 = vector.multi_reduction <add>, %94, %cst_40 [1, 2] : vector<1x16x1xf32> to vector<1xf32>
    %96 = vector.shape_cast %95 : vector<1xf32> to vector<1x1x1xf32>
    %97 = vector.extract %96[0, 0, 0] : f32 from vector<1x1x1xf32>
    %cst_41 = arith.constant 0.000000e+00 : f32
    %98 = vector.broadcast %cst_41 : f32 to vector<16x1xf32>
    %99 = arith.select %91, %43, %98 : vector<16x1xi1>, vector<16x1xf32>
    %100 = vector.shape_cast %99 : vector<16x1xf32> to vector<1x16x1xf32>
    %cst_42 = arith.constant dense<0.000000e+00> : vector<1xf32>
    %101 = vector.multi_reduction <add>, %100, %cst_42 [1, 2] : vector<1x16x1xf32> to vector<1xf32>
    %102 = vector.shape_cast %101 : vector<1xf32> to vector<1x1x1xf32>
    %103 = vector.extract %102[0, 0, 0] : f32 from vector<1x1x1xf32>
    %cst_43 = arith.constant 0.000000e+00 : f32
    %104 = vector.broadcast %cst_43 : f32 to vector<16x1xf32>
    %105 = arith.select %91, %85, %104 : vector<16x1xi1>, vector<16x1xf32>
    %106 = vector.shape_cast %105 : vector<16x1xf32> to vector<1x16x1xf32>
    %cst_44 = arith.constant dense<0.000000e+00> : vector<1xf32>
    %107 = vector.multi_reduction <add>, %106, %cst_44 [1, 2] : vector<1x16x1xf32> to vector<1xf32>
    %108 = vector.shape_cast %107 : vector<1xf32> to vector<1x1x1xf32>
    %109 = vector.extract %108[0, 0, 0] : f32 from vector<1x1x1xf32>
    %110 = tpu.iota {dimensions = array<i32: 1>} : vector<1x128xi32>
    %c0_i32 = arith.constant 0 : i32
    %111 = vector.broadcast %c0_i32 : i32 to vector<1x128xi32>
    %112 = arith.cmpi eq, %110, %111 : vector<1x128xi32>
    %cst_45 = arith.constant 0.000000e+00 : f32
    %113 = vector.broadcast %97 : f32 to vector<1x128xf32>
    %114 = vector.broadcast %cst_45 : f32 to vector<1x128xf32>
    %115 = arith.select %112, %113, %114 : vector<1x128xi1>, vector<1x128xf32>
    %c1_i32 = arith.constant 1 : i32
    %116 = vector.broadcast %c1_i32 : i32 to vector<1x128xi32>
    %117 = arith.cmpi eq, %110, %116 : vector<1x128xi32>
    %cst_46 = arith.constant 0.000000e+00 : f32
    %118 = vector.broadcast %103 : f32 to vector<1x128xf32>
    %119 = vector.broadcast %cst_46 : f32 to vector<1x128xf32>
    %120 = arith.select %117, %118, %119 : vector<1x128xi1>, vector<1x128xf32>
    %121 = arith.addf %115, %120 : vector<1x128xf32>
    %c2_i32 = arith.constant 2 : i32
    %122 = vector.broadcast %c2_i32 : i32 to vector<1x128xi32>
    %123 = arith.cmpi eq, %110, %122 : vector<1x128xi32>
    %cst_47 = arith.constant 0.000000e+00 : f32
    %124 = vector.broadcast %109 : f32 to vector<1x128xf32>
    %125 = vector.broadcast %cst_47 : f32 to vector<1x128xf32>
    %126 = arith.select %123, %124, %125 : vector<1x128xi1>, vector<1x128xf32>
    %127 = arith.addf %121, %126 : vector<1x128xf32>
    %128 = vector.shape_cast %127 : vector<1x128xf32> to vector<1x1x128xf32>
    %c0_48 = arith.constant 0 : index
    %c0_49 = arith.constant 0 : index
    %c0_50 = arith.constant 0 : index
    %129 = vector.load %arg12[%c0_48, %c0_49, %c0_50] : memref<1x1x128xf32, #tpu.memory_space<vmem>>, vector<1x1x128xf32>
    tpu.vector_store %arg12[%c0_48, %c0_49, %c0_50], %128 {strides = array<i32>} : memref<1x1x128xf32, #tpu.memory_space<vmem>>, vector<1x1x128xf32>,
    return
  }
  func.func @transform_0(%arg0: i32) -> (i32, i32) {
    %c0_i32 = arith.constant 0 : i32
    %c0_i32_0 = arith.constant 0 : i32
    return %arg0, %c0_i32 : i32, i32
  }
  func.func @transform_1(%arg0: i32) -> (i32, i32) {
    %c0_i32 = arith.constant 0 : i32
    %c0_i32_0 = arith.constant 0 : i32
    %c0_i32_1 = arith.constant 0 : i32
    return %c0_i32, %c0_i32_0 : i32, i32
  }
  func.func @transform_2(%arg0: i32) -> (i32, i32) {
    %c0_i32 = arith.constant 0 : i32
    %c0_i32_0 = arith.constant 0 : i32
    %c0_i32_1 = arith.constant 0 : i32
    return %c0_i32, %c0_i32_0 : i32, i32
  }
  func.func @transform_3(%arg0: i32) -> (i32, i32) {
    %c0_i32 = arith.constant 0 : i32
    %c0_i32_0 = arith.constant 0 : i32
    return %arg0, %c0_i32 : i32, i32
  }
  func.func @transform_4(%arg0: i32) -> (i32, i32) {
    %c0_i32 = arith.constant 0 : i32
    %c0_i32_0 = arith.constant 0 : i32
    %c0_i32_1 = arith.constant 0 : i32
    return %c0_i32, %c0_i32_0 : i32, i32
  }
  func.func @transform_5(%arg0: i32) -> (i32, i32) {
    %c0_i32 = arith.constant 0 : i32
    %c0_i32_0 = arith.constant 0 : i32
    %c0_i32_1 = arith.constant 0 : i32
    return %c0_i32, %c0_i32_0 : i32, i32
  }
  func.func @transform_6(%arg0: i32) -> (i32, i32) {
    %c0_i32 = arith.constant 0 : i32
    %c0_i32_0 = arith.constant 0 : i32
    %c0_i32_1 = arith.constant 0 : i32
    return %c0_i32, %c0_i32_0 : i32, i32
  }
  func.func @transform_7(%arg0: i32) -> (i32, i32) {
    %c0_i32 = arith.constant 0 : i32
    %c0_i32_0 = arith.constant 0 : i32
    return %arg0, %c0_i32 : i32, i32
  }
  func.func @transform_8(%arg0: i32) -> (i32, i32) {
    %c0_i32 = arith.constant 0 : i32
    %c0_i32_0 = arith.constant 0 : i32
    return %arg0, %c0_i32 : i32, i32
  }
  func.func @transform_9(%arg0: i32) -> (i32, i32) {
    %c0_i32 = arith.constant 0 : i32
    %c0_i32_0 = arith.constant 0 : i32
    return %arg0, %c0_i32 : i32, i32
  }
  func.func @transform_10(%arg0: i32) -> (i32, i32) {
    %c0_i32 = arith.constant 0 : i32
    %c0_i32_0 = arith.constant 0 : i32
    return %arg0, %c0_i32 : i32, i32
  }
  func.func @transform_11(%arg0: i32) -> (i32, i32, i32) {
    %c0_i32 = arith.constant 0 : i32
    %c0_i32_0 = arith.constant 0 : i32
    %c0_i32_1 = arith.constant 0 : i32
    return %arg0, %c0_i32, %c0_i32_0 : i32, i32, i32
  }
}

</mosaic_0001>

<bundles_post_ra>
// kernel: tpu_custom_call.1
= control target key start
LH: loop header
LB: loop body
LE: loop exit
PB: predicated region body
PF: predicated region fallthrough
CT: control target
= control target key end

     0   :  { %s2326_s0 = inlined_call_operand.hbm [shape: bf16[32,32], index: 0, kind: input, shape index: {}]   ;;  %s2327_s1 = inlined_call_operand.hbm [shape: bf16[32,128], index: 1, kind: input, shape index: {}]   ;;  %s2328_s2 = inlined_call_operand.hbm [shape: f32[1,128], index: 2, kind: input, shape index: {}]   ;;  %s2329_s3 = inlined_call_operand.vmem [shape: bf16[32,16], index: 3, kind: input, shape index: {}]   ;;  %s2330_s4 = inlined_call_operand.vmem [shape: bf16[128,128], index: 4, kind: input, shape index: {}]   ;;  %s2331_s5 = inlined_call_operand.vmem [shape: bf16[16,128], index: 5, kind: input, shape index: {}]   ;;  %s2332_s6 = inlined_call_operand.vmem [shape: f32[1,128], index: 6, kind: input, shape index: {}]   ;;  %s2333_s7 = inlined_call_operand.vmem [shape: s32[32,1], index: 7, kind: input, shape index: {}]   ;;  %s2334_s8 = inlined_call_operand.hbm [shape: f32[32,128], index: 8, kind: output, shape index: {0}]   ;;  %s2335_s9 = inlined_call_operand.hbm [shape: f32[32,128], index: 9, kind: output, shape index: {1}]   ;;  %s2336_s10 = inlined_call_operand.hbm [shape: f32[32,128], index: 10, kind: output, shape index: {2}]   ;;  %s2337_s11 = inlined_call_operand.hbm [shape: f32[2,1,128], index: 11, kind: output, shape index: {3}]  }
   0x1   :  { %2348 = sst [smem:[#allocation21_spill]] %s2326_s0 }
   0x2   :  { %2349 = sst [smem:[#allocation22_spill]] %s2327_s1 }
   0x3   :  { %2350 = sst [smem:[#allocation23_spill]] %s2328_s2 }
   0x4   :  { %2351 = sst [smem:[#allocation24_spill]] %s2329_s3 }
   0x5   :  { %2352 = sst [smem:[#allocation25_spill]] %s2330_s4 }
   0x6   :  { %2353 = sst [smem:[#allocation26_spill]] %s2337_s11 }
   0x7   :  { %17 = vsyncpa [#allocation3], 0 }
   0x8   :  { %19 = vsyncpa [#allocation3 + $0x1], 0 }
   0x9   :  { %20 = vsyncpa [#allocation6], 0 }
   0xa   :  { %21 = vsyncpa [#allocation4], 0 }
   0xb   :  { %23 = vsyncpa [#allocation4 + $0x1], 0 }
   0xc   :  { %24 = vsyncpa [#allocation10], 0 }
   0xd   :  { %26 = vsyncpa [#allocation10 + $0x1], 0 }
   0xe   :  { %27 = vsyncpa [#allocation13], 0 }
   0xf   :  { %29 = vsyncpa [#allocation13 + $0x1], 0  ;;  %s1817_s17 = smov 0   ;;  %s1819_s18 = smov 0  }
  0x10   :  { %s1821_s19 = smov 0   ;;  %s1823_s20 = smov 0  }
  0x11 LB: > { %2354 = sst [smem:[#allocation19_spill]] %s1729_s17  ;;  %s1838_s21 = sadd.s32 4294967295, %s1741_s20   ;;  %s1741_s20 = sphi %s1823_s20, %s2384_s20   ;;  %s1737_s19 = sphi %s1821_s19, %s2383_s19   ;;  %s1733_s18 = sphi %s1819_s18, %s2382_s18   ;;  %s1729_s17 = sphi %s1817_s17, %s2381_s17  }
  0x12   : > { %s2338_s22 = sadd.s32 4294967294, %s1741_s20   ;;  %p55_p0 = scmp.ne.s32.totalorder %s1733_s18, %s1729_s17 }
  0x13   : > { %p2339_p1 = scmp.eq.s32.totalorder %s1838_s21, 0  ;;  %p242_p3 = scmp.eq.s32.totalorder %s2338_s22, 1 }
  0x14   : > { %p1255_p5 = scmp.ge.s32.totalorder %s1741_s20, 1  ;;  %p327_p7 = scmp.lt.s32.totalorder %s1741_s20, 3 }
  0x15   : > { %p1849_p4 = por %p2339_p1, %p55_p0  ;;  %p1854_p6 = por %p242_p3, %p55_p0 }
  0x16   : > { %p1859_p8 = pnand %p1255_p5, %p327_p7  ;;  %s1743_s26 = smov [#allocation5]  }
  0x17   : > { %s2355_s23 = scalar_select %p1849_p4, 1, 0 }
  0x18   : > { %s2356_s24 = scalar_select %p1854_p6, 1, 0 }
  0x19   : > { %s339_s27 = sshll.u32 %s1743_s26, 4  ;;  %p1383_p9 = pneg %p1859_p8  ;;  %s1863_s27 = int_to_ptr.vmem [resolvable:$true] %s339_s27 }
  0x1a   : > { %2357 = sst [smem:[#allocation20_spill]] %s2356_s24  ;;  %s1744_s29 = smov [#allocation7]  }
  0x1b   : > { %p1870_p11 = pnand %p1383_p9, %p2339_p1  ;;  %s353_s30 = sshll.u32 %s1744_s29, 4  ;;  %s1874_s30 = int_to_ptr.vmem [resolvable:$true] %s353_s30 }
  0x1c   : > { %s2360_s1 = sld [smem:[#allocation22_spill]] }
  0x1d   : > { %p1495_p13 = pneg %p1870_p11 }
  0x22   : > { %s1493_s14 = scalar_lea.hbm %s2360_s1, 256 }
  0x23   : > { %p1494_p12 = scmp.ne.s32.totalorder %s2360_s1, %s1493_s14  ;;  %p1500_p5 = scmp.lt.u32.totalorder %s1493_s14, %s2360_s1 }
  0x25   : > { %p1496_p0 = pnand %p1495_p13, %p1494_p12 }
  0x27   : > { %p1497_p3 = pneg %p1496_p0 }
  0x29   : > { %p1502_p7 = pnand %p1500_p5, %p1497_p3 }
  0x2b   : > { %1505 = shalt.err (!%p1502_p7)
}
  0x2c   : > { %s1506_s29 = scalar_lea.vmem %s1863_s27, 256  ;;  %p1514_p2 = scmp.lt.s32.totalorder %s1863_s27, %s1863_s27 }
  0x2d   : > { %p1507_p9 = scmp.ne.s32.totalorder %s1863_s27, %s1506_s29  ;;  %p1515_p12 = scmp.lt.s32.totalorder %s1506_s29, %s1506_s29 }
  0x2f   : > { %p1509_p10 = pnand %p1507_p9, %p1495_p13  ;;  %p1516_p0 = por %p1515_p12, %p1514_p2 }
  0x31   : > { %p1510_p1 = pneg %p1509_p10 }
  0x33   : > { %p1517_p6 = pnand %p1516_p0, %p1510_p1 }
  0x35   : > { %1520 = shalt.err (!%p1517_p6)
}
  0x36   : > { %s2343_s22 = smov 64   ;;  %s2344_s12 = smov 4  }
  0x37   : > { %1386 = dma.hbm_to_vmem [thread:$0]  (!%p1870_p11), %s2360_s1, 256, %s1863_s27, [#allocation6], %s2343_s22, %s2343_s22, %s2344_s12  }
  0x38   : > { %s2361_s2 = sld [smem:[#allocation23_spill]] }
  0x3e   : > { %s1521_s26 = scalar_lea.hbm %s2361_s2, 16 }
  0x3f   : > { %p1522_p1 = scmp.ne.s32.totalorder %s2361_s2, %s1521_s26  ;;  %p1528_p10 = scmp.lt.u32.totalorder %s1521_s26, %s2361_s2 }
  0x41   : > { %p1524_p2 = pnand %p1522_p1, %p1495_p13 }
  0x43   : > { %p1525_p6 = pneg %p1524_p2 }
  0x45   : > { %p1530_p3 = pnand %p1528_p10, %p1525_p6 }
  0x47   : > { %1533 = shalt.err (!%p1530_p3)
}
  0x48   : > { %s1534_s27 = scalar_lea.vmem %s1874_s30, 16  ;;  %s1541_s24 = scalar_lea.vmem %s1874_s30, 32 }
  0x49   : > { %p1535_p5 = scmp.ne.s32.totalorder %s1874_s30, %s1534_s27  ;;  %p1542_p12 = scmp.lt.s32.totalorder %s1874_s30, %s1874_s30 }
  0x4a   : > { %p1543_p0 = scmp.lt.s32.totalorder %s1541_s24, %s1534_s27 }
  0x4b   : > { %p1537_p7 = pnand %p1535_p5, %p1495_p13 }
  0x4c   : > { %p1544_p1 = por %p1543_p0, %p1542_p12 }
  0x4d   : > { %p1538_p9 = pneg %p1537_p7 }
  0x4f   : > { %p1545_p2 = pnand %p1544_p1, %p1538_p9 }
  0x51   : > { %1548 = shalt.err (!%p1545_p2)
}
  0x52   : > { %1389 = dma.hbm_to_vmem [thread:$0]  (!%p1870_p11), %s2361_s2, 16, %s1874_s30, [#allocation6]  }
  0x53   : > { %s1933_s13 = sadd.s32 1, %s1741_s20   ;;  %s42_s28 = sadd.s32 1, %s1737_s19 }
  0x54   : > { %s39_s14 = ssub.s32 %s1741_s20, %s1933_s13  ;;  %p49_p13 = scmp.ne.s32.totalorder %s1737_s19, %s1733_s18 }
  0x55   : > { %p40_p6 = scmp.eq.s32.totalorder %s39_s14, 0  ;;  %p50_p10 = scmp.eq.s32.totalorder %s1741_s20, 0 }
  0x56   : > { %p2362_p3 = scmp.eq.s32.totalorder %s1838_s21, 1  ;;  %p1409_p7 = scmp.lt.s32.totalorder %s1741_s20, 2 }
  0x57   : > { %s1949_s16 = scalar_select %p40_p6, %s1737_s19, %s42_s28  }
  0x58   : > { %p1943_p5 = por %p2362_p3, %p49_p13  ;;  %p51_p9 = por %p50_p10, %p49_p13 }
  0x59   : > { %s373_s26 = sand.u32 1, %s1737_s19   ;;  %s1307_s30 = sshll.u32 %s1741_s20, 7 }
  0x5a   : > { %s2363_s15 = scalar_select %p1943_p5, 1, 0 }
  0x5b   : > { %s1259_s29 = sshll.u32 %s373_s26, 3  ;;  %s2364_s0 = sld [smem:[#allocation21_spill]] }
  0x5c   : > { %s377_s17 = scalar_lea.vmem [#allocation2], %s1259_s29  ;;  %p1960_p11 = pnand %p1409_p7, %p51_p9 }
  0x5d   : > { %s384_s14 = sshll.u32 %s377_s17, 4  ;;  %s1964_s22 = scalar_lea.sflag [#allocation3], %s373_s26  ;;  %s1958_s14 = int_to_ptr.vmem [resolvable:$true] %s384_s14 }
  0x5e   : > { %p1551_p0 = pneg %p1960_p11 }
  0x61   : > { %s1956_s11 = scalar_lea.hbm %s2364_s0, %s1307_s30  ;;  %s1554_s27 = scalar_lea.hbm %s2364_s0, 256 }
  0x62   : > { %s1549_s12 = scalar_lea.hbm %s1956_s11, 128  ;;  %p1555_p13 = scmp.lt.u32.totalorder %s1956_s11, %s2364_s0 }
  0x63   : > { %p1550_p12 = scmp.ne.s32.totalorder %s1956_s11, %s1549_s12  ;;  %p1556_p6 = scmp.lt.u32.totalorder %s1554_s27, %s1549_s12 }
  0x64   : > { %p1558_p3 = scmp.lt.u32.totalorder %s1549_s12, %s1956_s11 }
  0x65   : > { %p1552_p1 = pnand %p1551_p0, %p1550_p12  ;;  %p1557_p10 = por %p1556_p6, %p1555_p13 }
  0x67   : > { %p1553_p2 = pneg %p1552_p1  ;;  %p1559_p7 = por %p1558_p3, %p1557_p10 }
  0x69   : > { %p1560_p9 = pnand %p1559_p7, %p1553_p2 }
  0x6b   : > { %1563 = shalt.err (!%p1560_p9)
}
  0x6c   : > { %s1564_s26 = scalar_lea.vmem %s1958_s14, 128  ;;  %s1747_s29 = smov [#allocation2]  }
  0x6d   : > { %p1565_p12 = scmp.ne.s32.totalorder %s1958_s14, %s1564_s26  ;;  %s1569_s30 = sshll.u32 %s1747_s29, 4  ;;  %s1570_s30 = int_to_ptr.vmem [resolvable:$false] %s1569_s30 }
  0x6e   : > { %s1571_s24 = scalar_lea.vmem %s1570_s30, 256  ;;  %p1572_p4 = scmp.lt.s32.totalorder %s1958_s14, %s1570_s30 }
  0x6f   : > { %p1567_p1 = pnand %p1565_p12, %p1551_p0  ;;  %p1573_p13 = scmp.lt.s32.totalorder %s1571_s24, %s1564_s26 }
  0x71   : > { %p1568_p5 = pneg %p1567_p1  ;;  %p1574_p6 = por %p1573_p13, %p1572_p4 }
  0x73   : > { %p1575_p10 = pnand %p1574_p6, %p1568_p5 }
  0x75   : > { %1578 = shalt.err (!%p1575_p10)
}
  0x76   : > { %s2366_s12 = smov 4   ;;  %s2367_s27 = smov 64  }
  0x77   : > { %1393 = dma.hbm_to_vmem [thread:$0]  (!%p1960_p11), %s1956_s11, 128, %s1958_s14, %s1964_s22, %s2367_s27, %s2367_s27, %s2366_s12  }
  0x78   : > { %414 = sbr.rel (%p1859_p8) target bundleno = 1296 (0x510), region = 52  ;;  %s1998_s17 = sand.u32 (!%p1859_p8), 1, %s1733_s18  }
  0x79   : > { %s1263_s26 = sshll.u32 (!%p1859_p8), %s1998_s17, 3  ;;  %s417_s29 = scalar_lea.sflag (!%p1859_p8), [#allocation3], %s1998_s17 }
  0x7a   : > { %s420_s30 = scalar_lea.vmem (!%p1859_p8), [#allocation2], %s1263_s26  ;;  %p2368_p4 = scmp.ne.s32.totalorder (!%p1859_p8), %s2355_s23, 0 }
  0x7f   : > { %1708 = dma.done.wait (%p2368_p4), %s417_s29, 128  }
  0x80   : > { %1710 = vsyncadd (%p2368_p4), %s417_s29, 4294967168  ;;  %p2369_p5 = scmp.eq.s32.totalorder %s1838_s21, 0 }
  0x82   : > { %1712 = dma.done.wait (%p2369_p5), [#allocation6], 272   ;;  %p2370_p11 = pmov %p2369_p5 }
  0x83   : > { %v1748_v0 = vmov 0.0   ;;  %vm1749_vm0 = vmmov 0   ;;  %v1456_v1 = vld [vmem:[#allocation5] sm:$0xff]   ;;  %v1457_v2 = vld [vmem:[#allocation5 + $0x8] sm:$0xff]   ;;  %v1458_v3 = vld [vmem:[%s420_s30] sm:$0xff]   ;;  %vm538_vm1 = vcmask 261120  }
  0x84   : > { %1714 = vsyncadd (%p2370_p11), [#allocation6], 4294967024  ;;  %1325 = vmatprep.subr.bf16.mxu0 %v1748_v0  ;;  %1329 = vmatprep.mubr.msk.bf16.mxu0 %vm1749_vm0, %v1748_v0  ;;  %s2371_s4 = sld [smem:[#allocation25_spill]]  ;;  %s1269_s14 = sshll.u32 %s1838_s21, 1  ;;  %v1465_v6 = vld [vmem:[%s2331_s5] sm:$0xff]   ;;  %vm688_vm2 = vcmask 130048  }
  0x85   : > { %1339 = vmatprep.subr.bf16.mxu1 %v1748_v0  ;;  %1355 = vmatprep.mubr.msk.bf16.mxu1 %vm1749_vm0, %v1748_v0  ;;  %p493_p8 = scmp.lt.s32.totalorder %s1269_s14, 3  ;;  %s2372_s3 = sld [smem:[#allocation24_spill]]  ;;  %v1273_v14 = vld [vmem:[#allocation7] ss:$0 sm:$0xff] }
  0x86   : > { %1326 = vmatpush3.bf16.msra.mxu0 %v1456_v1  ;;  %s2059_s23 = sshll.u32 %s1998_s17, 4  ;;  %s981_s11 = sand.u32 1, %s1838_s21  }
  0x87   : > { %1327 = vmatprep.subr.bf16.mxu0 %v1748_v0  ;;  %s2386_s14 = smov (!%p493_p8, %s1269_s14), 3  ;;  %s2068_s25 = scalar_lea.vmem [#allocation8], %s2059_s23 }
  0x88   : > { %s1270_s26 = sshll.u32 %s2386_s14, 2  ;;  %s2111_s24 = scalar_lea.vmem [#allocation11], %s2059_s23 }
  0x89   : > { %s1272_s12 = sshll.u32 %s2386_s14, 3  ;;  %s2347_s14 = sshll.u32 %s1838_s21, 4 }
  0x8a   : > { %1328 = vmatpush3.bf16.msra.mxu0 %v1457_v2  ;;  %v1459_v4 = vld [vmem:[%s2371_s4] sm:$0xff]   ;;  %v1460_v5 = vld [vmem:[%s2371_s4 + $0x8] sm:$0xff]   ;;  %v1461_v7 = vld [vmem:[%s2371_s4 + $0x10] sm:$0xff]   ;;  %s502_s29 = scalar_lea.vmem %s2333_s7, %s1272_s12  ;;  %s2169_s28 = sshll.u32 %s1838_s21, 8 }
  0x8b   : > { %1333 = vmatprep.subr.bf16.mxu0 %v1748_v0  ;;  %1340 = vmatpush3.bf16.msra.mxu1 %v1459_v4  ;;  %v1462_v8 = vld [vmem:[%s2371_s4 + $0x18] sm:$0xff]   ;;  %s496_s22 = scalar_lea.vmem %s2372_s3, %s1270_s26  ;;  %v1463_v10 = vld [vmem:[%s2371_s4 + $0x20] sm:$0xff]   ;;  %v1464_v11 = vld [vmem:[%s2371_s4 + $0x28] sm:$0xff]   ;;  %s2175_s26 = scalar_lea.hbm %s2335_s9, %s2169_s28 }
  0x8c   : > { %1341 = vmatprep.subr.bf16.mxu1 %v1748_v0  ;;  %v1467_v9 = vld [vmem:[%s496_s22] sm:$0xff]   ;;  %v1466_v12 = vld [vmem:[%s2371_s4 + $0x30] sm:$0xff]   ;;  %v1468_v13 = vld [vmem:[%s2371_s4 + $0x38] sm:$0xff]   ;;  %s2085_s22 = scalar_lea.vmem [#allocation9], %s2059_s23  ;;  %s1036_s23 = sshll.u32 %s2111_s24, 4  ;;  %s2165_s23 = int_to_ptr.vmem [resolvable:$true] %s1036_s23 }
  0x8d   : > { %1330 = vmatmul.mubr.msk.bf16.vlgmr.msra.gmra.mrb[0].mxu0 %vm538_vm1, %v1458_v3  ;;  %vm923_vm1 = vcmask 7168   ;;  %s1020_s30 = sshll.u32 %s2085_s22, 4  ;;  %p2373_p2 = scmp.ne.s32.totalorder %s2363_s15, 0  ;;  %s2163_s30 = int_to_ptr.vmem [resolvable:$true] %s1020_s30 }
  0x8e   : > { %1335 = vmatprep.mubr.msk.bf16.mxu0 %vm1749_vm0, %v1748_v0  ;;  %1334 = vmatpush3.bf16.msra.mxu0 %v1465_v6 }
  0x8f   : > { %1342 = vmatpush3.bf16.msra.mxu1 %v1460_v5 }
  0x90   : > { %1343 = vmatprep.subr.bf16.mxu1 %v1748_v0 }
  0x93   : > { %1344 = vmatpush3.bf16.msra.mxu1 %v1461_v7 }
  0x94   : > { %1345 = vmatprep.subr.bf16.mxu1 %v1748_v0 }
  0x95   : > { %1336 = vmatmul.mubr.msk.bf16.vlgmr.msra.gmra.mrb[4].mxu0 %vm688_vm2, %v1467_v9 }
  0x97   : > { %1346 = vmatpush3.bf16.msra.mxu1 %v1462_v8 }
  0x98   : > { %1347 = vmatprep.subr.bf16.mxu1 %v1748_v0 }
  0x9b   : > { %1348 = vmatpush3.bf16.msra.mxu1 %v1463_v10 }
  0x9c   : > { %1349 = vmatprep.subr.bf16.mxu1 %v1748_v0 }
  0x9f   : > { %1350 = vmatpush3.bf16.msra.mxu1 %v1464_v11 }
  0xa0   : > { %1351 = vmatprep.subr.bf16.mxu1 %v1748_v0 }
  0xa3   : > { %1352 = vmatpush3.bf16.msra.mxu1 %v1466_v12 }
  0xa4   : > { %1353 = vmatprep.subr.bf16.mxu1 %v1748_v0 }
  0xa7   : > { %1354 = vmatpush3.bf16.msra.mxu1 %v1468_v13  ;;  %v1750_v13 = vmov 0  }
  0xa8   : > { %1454 = vset.pattern.permute.xlu0 %v1750_v13  ;;  %1455 = vset.pattern.permute.xlu1 %v1750_v13 }
 0x160   : > { %v576_v15 = vpop.f32.mrb[0].mxu0 }
 0x161   : > { %v2061_v16 = vadd.f32 %v1273_v14, %v576_v15  ;;  %v1331_v17 = vpop.f32.mrb[1].mxu0 }
 0x162   : > { %v579_v18 = vpop.f32.mrb[2].mxu0 }
 0x163   : > { %v616_v19 = vand.u32 2147483647, %v2061_v16  ;;  %v2064_v20 = vadd.f32 %v1273_v14, %v579_v18  ;;  %v1332_v21 = vpop.f32.mrb[3].mxu0  ;;  %v1278_v22 = vmul.f32 -1.442695, %v2061_v16  ;;  %583 = vst [vmem:[%s2068_s25] sm:$0xff] %v2061_v16  ;;  %v610_v56 = vmax.f32 %v2061_v16, 0.0 }
 0x164   : > { %vm612_vm5 = vcmp.ne.f32.partialorder %v2061_v16, %v2061_v16  ;;  %v585_v14 = vlaneseq }
 0x165   : > { %v618_v23 = vsub.f32 0.0, %v616_v19  ;;  %v617_v24 = vand.u32 2147483647, %v2064_v20  ;;  %1469 = vpow2.f32 %v1278_v22  ;;  %v1279_v25 = vmul.f32 -1.442695, %v2064_v20  ;;  %584 = vst [vmem:[%s2068_s25 + $0x8] sm:$0xff] %v2064_v20 }
 0x166   : > { %v611_v63 = vmax.f32 %v2064_v20, 0.0  ;;  %vm613_vm6 = vcmp.ne.f32.partialorder %v2064_v20, %v2064_v20  ;;  %v2107_v17 = vand.u32 127, %v585_v14 }
 0x167   : > { %v620_v26 = vmul.f32 1.442695, %v618_v23  ;;  %v619_v27 = vsub.f32 0.0, %v617_v24  ;;  %1471 = vpow2.f32 %v1279_v25 }
 0x168   : > { %v726_v9 = vpop.f32.mrb[4].mxu0  ;;  %vm833_vm7 = vcmp.lt.s32.totalorder %v2107_v17, 8  ;;  %vm587_vm12 = vcmp.lt.s32.totalorder %v2107_v17, 16 }
 0x169   : > { %1473 = vpow2.f32 %v620_v26  ;;  %v622_v28 = vmul.f32 1.442695, %v619_v27  ;;  %v1337_v10 = vpop.f32.mrb[5].mxu0  ;;  %v2119_v27 = vld [vmem:[%s502_s29] sm:$0xff] }
 0x16a   : > { %v729_v11 = vpop.f32.mrb[6].mxu0 }
 0x16b   : > { %1475 = vpow2.f32 %v622_v28  ;;  %v1338_v12 = vpop.f32.mrb[7].mxu0 }
 0x16f   : > { %v1470_v29 = vpop.eup %1469 }
 0x170   : > { %v594_v30 = vadd.f32 1.0, %v1470_v29 }
 0x171   : > { %v1472_v31 = vpop.eup %1471 }
 0x172   : > { %v595_v32 = vadd.f32 1.0, %v1472_v31  ;;  %1477 = vrcp.f32 %v594_v30 }
 0x173   : > { %v1474_v33 = vpop.eup %1473 }
 0x174   : > { %1479 = vrcp.f32 %v595_v32  ;;  %v624_v34 = vadd.f32 1.0, %v1474_v33  ;;  %v627_v37 = vmul.f32 -0.5, %v1474_v33  ;;  %v630_v44 = vand.u32 2147483647, %v1474_v33 }
 0x175   : > { %v1476_v35 = vpop.eup %1475 }
 0x176   : > { %1481 = vlog2.f32 %v624_v34  ;;  %v633_v36 = vadd.f32 1.0, %v1476_v35  ;;  %v636_v38 = vmul.f32 -0.5, %v1476_v35  ;;  %v628_v41 = vadd.f32 1.0, %v627_v37 }
 0x177   : > { %v639_v50 = vand.u32 2147483647, %v1476_v35  ;;  %vm631_vm3 = vcmp.lt.f32.partialorder %v630_v44, 0.0004427343 }
 0x178   : > { %1483 = vlog2.f32 %v633_v36  ;;  %v637_v45 = vadd.f32 1.0, %v636_v38  ;;  %v629_v54 = vmul.f32 %v1474_v33, %v628_v41 }
 0x179   : > { %vm640_vm4 = vcmp.lt.f32.partialorder %v639_v50, 0.0004427343 }
 0x17a   : > { %v638_v57 = vmul.f32 %v1476_v35, %v637_v45 }
 0x17c   : > { %v1478_v39 = vpop.eup %1477 }
 0x17d   : > { %v600_v40 = vmul.f32 1.2, %v1478_v39  ;;  %v2077_v42 = vmul.f32 %v1478_v39, %v2061_v16  ;;  %v2128_v39 = vld [vmem:[%s502_s29 + $0x8] sm:$0xff]  ;;  %s2177_s29 = scalar_lea.sflag [#allocation10], %s981_s11 }
 0x17e   : > { %v1480_v43 = vpop.eup %1479 }
 0x17f   : > { %v601_v46 = vmul.f32 1.2, %v1480_v43  ;;  %v602_v47 = vadd.f32 -0.1, %v600_v40  ;;  %v2080_v48 = vmul.f32 %v1480_v43, %v2064_v20 }
 0x180   : > { %v1482_v49 = vpop.eup %1481 }
 0x181   : > { %v603_v51 = vadd.f32 -0.1, %v601_v46  ;;  %v604_v52 = vmax.f32 %v602_v47, 0.0  ;;  %v626_v53 = vmul.f32 0.6931472, %v1482_v49 }
 0x182   : > { %v1484_v55 = vpop.eup %1483 }
 0x183   : > { %v605_v58 = vmax.f32 %v603_v51, 0.0  ;;  %v606_v59 = vmin.f32 %v604_v52, 1.0  ;;  %v632_v60 = vsel %vm631_vm3, %v629_v54, %v626_v53  ;;  %v635_v61 = vmul.f32 0.6931472, %v1484_v55 }
 0x184   : > { %v642_v62 = vadd.f32 %v632_v60, %v610_v56 }
 0x185   : > { %v607_v1 = vmin.f32 %v605_v58, 1.0  ;;  %608 = vst [vmem:[%s2085_s22] sm:$0xff] %v606_v59  ;;  %v641_v2 = vsel %vm640_vm4, %v638_v57, %v635_v61 }
 0x186   : > { %v2091_v3 = vsel %vm612_vm5, %v2061_v16, %v642_v62  ;;  %v643_v4 = vadd.f32 %v641_v2, %v611_v63  ;;  %v1291_v16 = vld [vmem:[%s2332_s6] ss:$0 sm:$0xff]  ;;  %v914_v62 = vshrl.u32 %v585_v14, 7  ;;  %v916_v63 = vstv %s2347_s14 }
 0x187   : > { %609 = vst [vmem:[%s2085_s22 + $0x8] sm:$0xff] %v607_v1  ;;  %v656_v5 = vpack.c.bf16 %v607_v1, %v606_v59  ;;  %v648_v6 = vsub.f32 %v2091_v3, %v2077_v42  ;;  %s1579_s22 = scalar_lea.vmem %s2163_s30, 256 }
 0x188   : > { %v2099_v7 = vsel %vm613_vm6, %v2064_v20, %v643_v4  ;;  %v915_v2 = vadd.s32 8, %v914_v62  ;;  %v917_v4 = vadd.s32 %v916_v63, %v914_v62  ;;  %p1580_p0 = scmp.ne.s32.totalorder %s2163_s30, %s1579_s22 }
 0x189   : > { %1356 = vmatmul.mubr.bf16.vlgmr.msra.gmra.mrb[0].mxu1 %v656_v5  ;;  %v649_v8 = vsub.f32 %v2099_v7, %v2080_v48  ;;  %v650_v52 = vsel %vm587_vm12, %v648_v6, 0.0 }
 0x18a   : > { %v918_v48 = vadd.s32 %v916_v63, %v915_v2  ;;  %vm919_vm15 = vcmp.lt.s32.totalorder %v917_v4, 32  ;;  %p1581_p3 = pnand %p1580_p0, %p2373_p2 }
 0x18b   : > { %v651_v58 = vsel %vm587_vm12, %v649_v8, 0.0 }
 0x18c   : > { %vm920_vm0 = vcmp.lt.s32.totalorder %v918_v48, 32  ;;  %p1582_p7 = pneg %p1581_p3 }
 0x25c   : > { %v815_v15 = vpop.f32.mrb[0].mxu1 }
 0x25d   : > { %v816_v18 = vadd.f32 %v815_v15, %v726_v9  ;;  %v1357_v19 = vpop.f32.mrb[1].mxu1 }
 0x25e   : > { %v818_v20 = vpop.f32.mrb[2].mxu1 }
 0x25f   : > { %v829_v21 = vadd.f32 %v1291_v16, %v816_v18  ;;  %v819_v22 = vadd.f32 %v818_v20, %v729_v11  ;;  %v1358_v23 = vpop.f32.mrb[3].mxu1 }
 0x261   : > { %831 = vst [vmem:[%s2111_s24] sm:$0xff] %v829_v21  ;;  %v830_v24 = vadd.f32 %v1291_v16, %v819_v22  ;;  %v834_v25 = vsel %vm833_vm7, %v829_v21, -1e+30 }
 0x262   : > { %838 = vmax.xlane.f32.xlu0 %v834_v25 }
 0x263   : > { %832 = vst [vmem:[%s2111_s24 + $0x8] sm:$0xff] %v830_v24  ;;  %v835_v26 = vsel %vm833_vm7, %v830_v24, -1e+30  ;;  %s1751_s24 = smov [#allocation9]  }
 0x264   : > { %s1583_s14 = sshll.u32 %s1751_s24, 4  ;;  %s1584_s14 = int_to_ptr.vmem [resolvable:$false] %s1583_s14 }
 0x265   : > { %s1585_s0 = scalar_lea.vmem %s1584_s14, 512  ;;  %p1586_p9 = scmp.lt.s32.totalorder %s2163_s30, %s1584_s14 }
 0x266   : > { %840 = vmax.xlane.f32.xlu0 %v835_v26  ;;  %p1587_p12 = scmp.lt.s32.totalorder %s1585_s0, %s1579_s22 }
 0x268   : > { %p1588_p1 = por %p1587_p12, %p1586_p9 }
 0x26a   : > { %p1589_p13 = pnand %p1588_p1, %p1582_p7 }
 0x27c   : > { %859 = vperm.xlu0 %1454, %v2119_v27  }
 0x2ef   : > { %v839_v28 = vpop.xlane.xlu0 %838 }
 0x2f0   : > { %vm874_vm8 = vcmp.eq.f32.partialorder %v834_v25, %v839_v28  ;;  %v842_v40 = vsub.f32 %v834_v25, %v839_v28 }
 0x2f1   : > { %v876_v29 = vsel %vm874_vm8, %v2107_v17, 128 }
 0x2f2   : > { %v879_v30 = vshra.s32 %v876_v29, 16  ;;  %v844_v41 = vmul.f32 1.442695, %v842_v40  ;;  %v878_v51 = vand.u32 65535, %v876_v29 }
 0x2f3   : > { %v2123_v31 = vpop.xlane.xlu0 %840 }
 0x2f4   : > { %v843_v32 = vsub.f32 %v835_v26, %v2123_v31  ;;  %vm875_vm9 = vcmp.eq.f32.partialorder %v835_v26, %v2123_v31  ;;  %v881_v33 = vcvt.s32.f32 %v879_v30  ;;  %v880_v53 = vcvt.s32.f32 %v878_v51 }
 0x2f5   : > { %v877_v34 = vsel %vm875_vm9, %v2107_v17, 128 }
 0x2f6   : > { %v846_v35 = vmul.f32 1.442695, %v843_v32  ;;  %882 = vmin.xlane.f32.xlu1 %v881_v33  ;;  %v893_v36 = vshra.s32 %v877_v34, 16  ;;  %v892_v54 = vand.u32 65535, %v877_v34 }
 0x2f8   : > { %1485 = vpow2.f32 %v846_v35  ;;  %v895_v37 = vcvt.s32.f32 %v893_v36  ;;  %v894_v56 = vcvt.s32.f32 %v892_v54 }
 0x2f9   : > { %1487 = vpow2.f32 %v844_v41 }
 0x2fa   : > { %896 = vmin.xlane.f32.xlu1 %v895_v37 }
 0x2fb   : > { %v860_v43 = vpop.permute.xlu0 %859 }
 0x2fc   : > { %vm864_vm10 = vcmp.eq.s32.totalorder %v2107_v17, %v860_v43 }
 0x2fd   : > { %v866_v45 = vsel %vm864_vm10, %v834_v25, 0.0 }
 0x302   : > { %v1486_v38 = vpop.eup %1485 }
 0x303   : > { %850 = vadd.xlane.f32.xlu0 %v1486_v38  ;;  %v1488_v44 = vpop.eup %1487 }
 0x30b   : > { %862 = vperm.xlu1 %1455, %v2128_v39  }
 0x32f   : > { %848 = vadd.xlane.f32.xlu1 %v1488_v44 }
 0x333   : > { %868 = vadd.xlane.f32.xlu1 %v866_v45 }
 0x383   : > { %v883_v46 = vpop.xlane.xlu1 %882 }
 0x384   : > { %vm884_vm13 = vcmp.eq.f32.partialorder %v881_v33, %v883_v46  ;;  %v889_v16 = vcvt.f32.s32 %v883_v46 }
 0x385   : > { %v885_v55 = vsel %vm884_vm13, %v880_v53, inf }
 0x386   : > { %v890_v20 = vshll.u32 %v889_v16, 16 }
 0x387   : > { %v897_v47 = vpop.xlane.xlu1 %896 }
 0x388   : > { %vm898_vm14 = vcmp.eq.f32.partialorder %v895_v37, %v897_v47  ;;  %v903_v21 = vcvt.f32.s32 %v897_v47 }
 0x389   : > { %v899_v57 = vsel %vm898_vm14, %v894_v56, inf }
 0x38a   : > { %v904_v25 = vshll.u32 %v903_v21, 16 }
 0x38b   : > { %v863_v49 = vpop.permute.xlu1 %862 }
 0x38c   : > { %vm865_vm11 = vcmp.eq.s32.totalorder %v2107_v17, %v863_v49 }
 0x38d   : > { %v867_v50 = vsel %vm865_vm11, %v835_v26, 0.0 }
 0x38e   : > { %870 = vadd.xlane.f32.xlu1 %v867_v50 }
 0x390   : > { %v851_v42 = vpop.xlane.xlu0 %850 }
 0x392   : > { %652 = vadd.xlane.f32.xlu1 %v650_v52 }
 0x396   : > { %886 = vmin.xlane.f32.xlu1 %v885_v55 }
 0x39a   : > { %900 = vmin.xlane.f32.xlu1 %v899_v57 }
 0x39e   : > { %654 = vadd.xlane.f32.xlu1 %v651_v58 }
 0x3bc   : > { %v849_v59 = vpop.xlane.xlu1 %848 }
 0x3bd   : > { %1489 = vlog2.f32 %v849_v59 }
 0x3be   : > { %1491 = vlog2.f32 %v851_v42 }
 0x3c0   : > { %v869_v6 = vpop.xlane.xlu1 %868 }
 0x3c7   : > { %v1490_v60 = vpop.eup %1489 }
 0x3c8   : > { %v853_v61 = vmul.f32 0.6931472, %v1490_v60  ;;  %v1492_v1 = vpop.eup %1491 }
 0x3c9   : > { %v855_v5 = vmul.f32 0.6931472, %v1492_v1 }
 0x3ca   : > { %v856_v3 = vadd.f32 %v853_v61, %v839_v28 }
 0x3cb   : > { %v857_v8 = vadd.f32 %v855_v5, %v2123_v31 }
 0x3cc   : > { %v872_v7 = vsub.f32 %v856_v3, %v869_v6 }
 0x3ce   : > { %v921_v10 = vsel %vm919_vm15, %v872_v7, 0.0 }
 0x3cf   : > { %v924_v14 = vsel %vm923_vm1, %v921_v10, 0.0 }
 0x41b   : > { %v871_v9 = vpop.xlane.xlu1 %870 }
 0x41c   : > { %v873_v11 = vsub.f32 %v857_v8, %v871_v9 }
 0x41e   : > { %v922_v12 = vsel %vm920_vm0, %v873_v11, 0.0 }
 0x41f   : > { %v653_v13 = vpop.xlane.xlu1 %652  ;;  %v925_v15 = vsel %vm923_vm1, %v922_v12, 0.0 }
 0x420   : > { %v926_v18 = vadd.f32 %v925_v15, %v924_v14  ;;  %v936_v29 = vsel %vm919_vm15, %v653_v13, 0.0 }
 0x421   : > { %v938_v34 = vsel %vm923_vm1, %v936_v29, 0.0 }
 0x422   : > { %927 = vadd.xlane.f32.xlu0 %v926_v18 }
 0x423   : > { %v887_v19 = vpop.xlane.xlu1 %886 }
 0x424   : > { %v888_v22 = vcvt.f32.s32 %v887_v19 }
 0x426   : > { %v891_v23 = vadd.s32 %v890_v20, %v888_v22 }
 0x427   : > { %v901_v24 = vpop.xlane.xlu1 %900 }
 0x428   : > { %vm906_vm2 = vcmp.eq.s32.totalorder %v891_v23, %v2119_v27  ;;  %v902_v26 = vcvt.f32.s32 %v901_v24 }
 0x429   : > { %v1292_v28 = vsel %vm906_vm2, 1.0, %v1748_v0 }
 0x42a   : > { %v905_v30 = vadd.s32 %v904_v25, %v902_v26  ;;  %v950_v33 = vsel %vm919_vm15, %v1292_v28, 0.0 }
 0x42b   : > { %v655_v31 = vpop.xlane.xlu1 %654  ;;  %v952_v38 = vsel %vm923_vm1, %v950_v33, 0.0 }
 0x42c   : > { %vm907_vm3 = vcmp.eq.s32.totalorder %v905_v30, %v2128_v39  ;;  %v937_v32 = vsel %vm920_vm0, %v655_v31, 0.0 }
 0x42d   : > { %v939_v27 = vsel %vm923_vm1, %v937_v32, 0.0  ;;  %v1293_v35 = vsel %vm907_vm3, 1.0, %v1748_v0 }
 0x42e   : > { %v940_v36 = vadd.f32 %v939_v27, %v938_v34  ;;  %v951_v37 = vsel %vm920_vm0, %v1293_v35, 0.0 }
 0x42f   : > { %v953_v39 = vsel %vm923_vm1, %v951_v37, 0.0 }
 0x430   : > { %941 = vadd.xlane.f32.xlu1 %v940_v36  ;;  %v954_v40 = vadd.f32 %v953_v39, %v952_v38 }
 0x432   : > { %955 = vadd.xlane.f32.xlu0 %v954_v40 }
 0x433   : > { %1592 = shalt.err (!%p1589_p13)
}
 0x434   : > { %s1593_s11 = scalar_lea.hbm %s2175_s26, 256  ;;  %s1597_s24 = scalar_lea.hbm %s2335_s9, 512 }
 0x435   : > { %p1594_p6 = scmp.ne.s32.totalorder %s2175_s26, %s1593_s11  ;;  %p1598_p5 = scmp.lt.u32.totalorder %s2175_s26, %s2335_s9 }
 0x436   : > { %p1599_p11 = scmp.lt.u32.totalorder %s1597_s24, %s1593_s11  ;;  %p1601_p0 = scmp.lt.u32.totalorder %s1593_s11, %s2175_s26 }
 0x437   : > { %p1595_p10 = pnand %p1594_p6, %p2373_p2 }
 0x438   : > { %p1600_p8 = por %p1599_p11, %p1598_p5 }
 0x439   : > { %p1596_p4 = pneg %p1595_p10 }
 0x43a   : > { %p1602_p3 = por %p1601_p0, %p1600_p8 }
 0x43c   : > { %p1603_p7 = pnand %p1602_p3, %p1596_p4 }
 0x43e   : > { %1606 = shalt.err (!%p1603_p7)
}
 0x43f   : > { %s1752_s0 = smov 128   ;;  %s1753_s22 = smov 8  }
 0x440   : > { %1376 = dma.vmem_to_hbm [thread:$0]  (%p2373_p2), %s2163_s30, 256, %s2175_s26, %s2177_s29, %s1752_s0, %s1752_s0, %s1753_s22  }
 0x441   : > { %s2208_s12 = scalar_lea.hbm %s2334_s8, %s2169_s28  ;;  %s1004_s27 = sshll.u32 %s2068_s25, 4  ;;  %s2217_s27 = int_to_ptr.vmem [resolvable:$true] %s1004_s27 }
 0x442   : > { %s2215_s2 = scalar_lea.hbm %s2336_s10, %s2169_s28  ;;  %s977_s3 = scalar_lea.sflag [#allocation4], %s1998_s17 }
 0x443   : > { %s1607_s4 = scalar_lea.vmem %s2217_s27, 256  ;;  %s1754_s30 = smov [#allocation8]  }
 0x444   : > { %p1608_p9 = scmp.ne.s32.totalorder %s2217_s27, %s1607_s4  ;;  %s1611_s26 = sshll.u32 %s1754_s30, 4  ;;  %s1612_s26 = int_to_ptr.vmem [resolvable:$false] %s1611_s26 }
 0x445   : > { %s1613_s25 = scalar_lea.vmem %s1612_s26, 512  ;;  %p1614_p13 = scmp.lt.s32.totalorder %s2217_s27, %s1612_s26 }
 0x446   : > { %p1609_p12 = pnand %p1608_p9, %p2373_p2  ;;  %p1615_p6 = scmp.lt.s32.totalorder %s1613_s25, %s1607_s4 }
 0x448   : > { %p1610_p1 = pneg %p1609_p12  ;;  %p1616_p10 = por %p1615_p6, %p1614_p13 }
 0x44a   : > { %p1617_p4 = pnand %p1616_p10, %p1610_p1 }
 0x44c   : > { %1620 = shalt.err (!%p1617_p4)
}
 0x44d   : > { %s1621_s28 = scalar_lea.hbm %s2208_s12, 256  ;;  %s1625_s24 = scalar_lea.hbm %s2334_s8, 512 }
 0x44e   : > { %p1622_p5 = scmp.ne.s32.totalorder %s2208_s12, %s1621_s28  ;;  %p1626_p0 = scmp.lt.u32.totalorder %s2208_s12, %s2334_s8 }
 0x44f   : > { %p1627_p3 = scmp.lt.u32.totalorder %s1625_s24, %s1621_s28  ;;  %p1629_p9 = scmp.lt.u32.totalorder %s1621_s28, %s2208_s12 }
 0x450   : > { %p1623_p11 = pnand %p1622_p5, %p2373_p2 }
 0x451   : > { %p1628_p7 = por %p1627_p3, %p1626_p0 }
 0x452   : > { %p1624_p8 = pneg %p1623_p11 }
 0x453   : > { %p1630_p12 = por %p1629_p9, %p1628_p7 }
 0x455   : > { %p1631_p1 = pnand %p1630_p12, %p1624_p8 }
 0x457   : > { %1634 = shalt.err (!%p1631_p1)
}
 0x458   : > { %1375 = dma.vmem_to_hbm [thread:$0]  (%p2373_p2), %s2217_s27, 256, %s2208_s12, %s977_s3, %s1752_s0, %s1752_s0, %s1753_s22  }
 0x459   : > { %s1635_s4 = scalar_lea.vmem %s2165_s23, 256  ;;  %s1755_s26 = smov [#allocation11]  }
 0x45a   : > { %p1636_p13 = scmp.ne.s32.totalorder %s2165_s23, %s1635_s4  ;;  %s1639_s25 = sshll.u32 %s1755_s26, 4  ;;  %s1640_s25 = int_to_ptr.vmem [resolvable:$false] %s1639_s25 }
 0x45b   : > { %s1641_s28 = scalar_lea.vmem %s1640_s25, 512  ;;  %p1642_p4 = scmp.lt.s32.totalorder %s2165_s23, %s1640_s25 }
 0x45c   : > { %p1637_p6 = pnand %p1636_p13, %p2373_p2  ;;  %p1643_p5 = scmp.lt.s32.totalorder %s1641_s28, %s1635_s4 }
 0x45e   : > { %p1638_p10 = pneg %p1637_p6  ;;  %p1644_p11 = por %p1643_p5, %p1642_p4 }
 0x460   : > { %p1645_p8 = pnand %p1644_p11, %p1638_p10 }
 0x462   : > { %1648 = shalt.err (!%p1645_p8)
}
 0x463   : > { %s1649_s3 = scalar_lea.hbm %s2215_s2, 256  ;;  %s1653_s1 = scalar_lea.hbm %s2336_s10, 512 }
 0x464   : > { %p1650_p0 = scmp.ne.s32.totalorder %s2215_s2, %s1649_s3  ;;  %p1654_p9 = scmp.lt.u32.totalorder %s2215_s2, %s2336_s10 }
 0x465   : > { %p1655_p12 = scmp.lt.u32.totalorder %s1653_s1, %s1649_s3  ;;  %p1657_p13 = scmp.lt.u32.totalorder %s1649_s3, %s2215_s2 }
 0x466   : > { %p1651_p3 = pnand %p1650_p0, %p2373_p2 }
 0x467   : > { %p1656_p1 = por %p1655_p12, %p1654_p9 }
 0x468   : > { %p1652_p7 = pneg %p1651_p3 }
 0x469   : > { %p1658_p6 = por %p1657_p13, %p1656_p1 }
 0x46b   : > { %p1659_p10 = pnand %p1658_p6, %p1652_p7 }
 0x46d   : > { %1662 = shalt.err (!%p1659_p10)
}
 0x46e   : > { %1377 = dma.vmem_to_hbm [thread:$0]  (%p2373_p2), %s2165_s23, 256, %s2215_s2, %s2177_s29, %s1752_s0, %s1752_s0, %s1753_s22   ;;  %vm964_vm4 = vcmp.eq.s32.totalorder %v2107_v17, 0  ;;  %vm967_vm5 = vcmp.eq.s32.totalorder %v2107_v17, 1  ;;  %vm971_vm6 = vcmp.eq.s32.totalorder %v2107_v17, 2 }
 0x46f   : > { %s490_s0 = scalar_lea.vmem [#allocation12], %s1998_s17  ;;  %s2374_s14 = sshll.u32 %s1838_s21, 4 }
 0x470   : > { %s1052_s22 = sshll.u32 %s490_s0, 4  ;;  %s2375_s26 = sld [smem:[#allocation26_spill]]  ;;  %s2282_s22 = int_to_ptr.vmem [resolvable:$true] %s1052_s22 }
 0x471   : > { %s992_s28 = scalar_lea.sflag [#allocation13], %s1998_s17  ;;  %s1663_s3 = scalar_lea.vmem %s2282_s22, 16 }
 0x472   : > { %p1664_p4 = scmp.ne.s32.totalorder %s2282_s22, %s1663_s3  ;;  %s1756_s12 = smov [#allocation12]  }
 0x473   : > { %s1667_s27 = sshll.u32 %s1756_s12, 4  ;;  %s1668_s27 = int_to_ptr.vmem [resolvable:$false] %s1667_s27 }
 0x474   : > { %p1665_p5 = pnand %p1664_p4, %p2373_p2  ;;  %s1669_s21 = scalar_lea.vmem %s1668_s27, 32 }
 0x475   : > { %p1670_p8 = scmp.lt.s32.totalorder %s2282_s22, %s1668_s27  ;;  %p1671_p0 = scmp.lt.s32.totalorder %s1669_s21, %s1663_s3 }
 0x476   : > { %s2280_s25 = scalar_lea.hbm %s2375_s26, %s2374_s14  ;;  %p1666_p11 = pneg %p1665_p5 }
 0x477   : > { %p1672_p3 = por %p1671_p0, %p1670_p8 }
 0x479   : > { %p1673_p7 = pnand %p1672_p3, %p1666_p11 }
 0x4af   : > { %v928_v0 = vpop.xlane.xlu0 %927 }
 0x4b0   : > { %v929_v41 = vrot.slane %v928_v0, 4 }
 0x4b2   : > { %v930_v43 = vadd.f32 %v929_v41, %v928_v0 }
 0x4b4   : > { %v931_v44 = vrot.slane %v930_v43, 2 }
 0x4b6   : > { %v932_v45 = vadd.f32 %v931_v44, %v930_v43 }
 0x4b8   : > { %v933_v46 = vrot.slane %v932_v45, 1 }
 0x4ba   : > { %v934_v47 = vadd.f32 %v933_v46, %v932_v45 }
 0x4bc   : > { %1359 = vpush %v934_v47 }
 0x4bd   : > { %v942_v49 = vpop.xlane.xlu1 %941 }
 0x4be   : > { %v943_v50 = vrot.slane %v942_v49, 4 }
 0x4bf   : > { %v956_v51 = vpop.xlane.xlu0 %955 }
 0x4c0   : > { %v944_v52 = vadd.f32 %v943_v50, %v942_v49  ;;  %v957_v53 = vrot.slane %v956_v51, 4 }
 0x4c2   : > { %v945_v54 = vrot.slane %v944_v52, 2  ;;  %v958_v55 = vadd.f32 %v957_v53, %v956_v51 }
 0x4c4   : > { %v946_v56 = vadd.f32 %v945_v54, %v944_v52  ;;  %v959_v57 = vrot.slane %v958_v55, 2 }
 0x4c6   : > { %v960_v58 = vadd.f32 %v959_v57, %v958_v55  ;;  %v947_v59 = vrot.slane %v946_v56, 1 }
 0x4c8   : > { %v948_v42 = vadd.f32 %v947_v59, %v946_v56  ;;  %v961_v60 = vrot.slane %v960_v58, 1 }
 0x4ca   : > { %1361 = vpush %v948_v42  ;;  %v962_v61 = vadd.f32 %v961_v60, %v960_v58 }
 0x4cc   : > { %1363 = vpush %v962_v61 }
 0x4ed   : > { %s1360_s2 = spop %1359 }
 0x4ee   : > { %v965_v62 = vstv %s1360_s2 }
 0x4ef   : > { %v966_v1 = vsel %vm964_vm4, %v965_v62, 0.0 }
 0x4fb   : > { %s1362_s23 = spop %1361 }
 0x4fc   : > { %v968_v63 = vstv %s1362_s23 }
 0x4fd   : > { %v969_v2 = vsel %vm967_vm5, %v968_v63, 0.0  ;;  %s1364_s29 = spop %1363 }
 0x4fe   : > { %v970_v3 = vadd.f32 %v969_v2, %v966_v1  ;;  %v972_v4 = vstv %s1364_s29 }
 0x4ff   : > { %v973_v5 = vsel %vm971_vm6, %v972_v4, 0.0 }
 0x500   : > { %v974_v6 = vadd.f32 %v973_v5, %v970_v3 }
 0x502   : > { %975 = vst [vmem:[%s490_s0] sm:$0x1] %v974_v6 }
 0x503   : > { %1676 = shalt.err (!%p1673_p7)
}
 0x504   : > { %s1677_s17 = scalar_lea.hbm %s2280_s25, 16  ;;  %s1681_s24 = scalar_lea.hbm %s2375_s26, 32 }
 0x505   : > { %p1678_p9 = scmp.ne.s32.totalorder %s2280_s25, %s1677_s17  ;;  %p1682_p13 = scmp.lt.u32.totalorder %s2280_s25, %s2375_s26 }
 0x506   : > { %p1683_p6 = scmp.lt.u32.totalorder %s1681_s24, %s1677_s17  ;;  %p1685_p4 = scmp.lt.u32.totalorder %s1677_s17, %s2280_s25 }
 0x507   : > { %p1679_p12 = pnand %p1678_p9, %p2373_p2 }
 0x508   : > { %p1684_p10 = por %p1683_p6, %p1682_p13 }
 0x509   : > { %p1680_p1 = pneg %p1679_p12 }
 0x50a   : > { %p1686_p5 = por %p1685_p4, %p1684_p10 }
 0x50c   : > { %p1687_p11 = pnand %p1686_p5, %p1680_p1 }
 0x50e   : > { %1690 = shalt.err (!%p1687_p11)
}
 0x50f   : > { %1378 = dma.vmem_to_hbm [thread:$0]  (%p2373_p2), %s2282_s22, 16, %s2280_s25, %s992_s28  }
 0x510 PF: > { %s2376_s29 = sld [smem:[#allocation19_spill]]  ;;  %s2377_s0 = sld [smem:[#allocation20_spill]] }
 0x511   : > { %p2379_p0 = scmp.ge.s32.totalorder %s1741_s20, 2 }
 0x516   : > { %s1064_s14 = sand.u32 1, %s2376_s29   ;;  %p2378_p8 = scmp.ne.s32.totalorder %s2377_s0, 0 }
 0x517   : > { %s1065_s30 = scalar_lea.sflag [#allocation4], %s1064_s14 }
 0x518   : > { %p1395_p3 = pnand %p2379_p0, %p2378_p8 }
 0x51a   : > { %1716 = dma.done.wait (!%p1395_p3), %s1065_s30, 256  }
 0x51b   : > { %1718 = vsyncadd (!%p1395_p3), %s1065_s30, 4294967040  ;;  %s2380_s4 = sadd.s32 4294967294, %s1741_s20  }
 0x51c   : > { %s1073_s3 = sand.u32 1, %s2380_s4  }
 0x51d   : > { %s1074_s12 = scalar_lea.sflag [#allocation10], %s1073_s3 }
 0x51e   : > { %1720 = dma.done.wait (!%p1395_p3), %s1074_s12, 512  }
 0x51f   : > { %1722 = vsyncadd (!%p1395_p3), %s1074_s12, 4294966784  ;;  %s1092_s15 = scalar_lea.sflag [#allocation13], %s1064_s14 }
 0x520   : > { %1724 = dma.done.wait (!%p1395_p3), %s1092_s15, 16  }
 0x521   : > { %1726 = vsyncadd (!%p1395_p3), %s1092_s15, 4294967280  ;;  %p32_p2 = scmp.ge.s32.totalorder %s1933_s13, 4   ;;  %s2381_s17 = smov %s1733_s18 }
 0x522   : > { %s2382_s18 = smov %s1737_s19  ;;  %s2383_s19 = smov %s1949_s16 }
 0x523   : > { %s2384_s20 = smov %s1933_s13  ;;  %34 = sbr.rel (!%p32_p2) target bundleno = 17 (0x11), region = 160 }
 0x52a   :  { %1096 = vsyncpa [#allocation3], 1 }
 0x52b   :  { %1098 = vsyncpa [#allocation3 + $0x1], 1 }
 0x52c   :  { %1099 = vsyncpa [#allocation6], 1 }
 0x52d   :  { %1100 = vsyncpa [#allocation4], 1 }
 0x52e   :  { %1102 = vsyncpa [#allocation4 + $0x1], 1 }
 0x52f   :  { %1103 = vsyncpa [#allocation10], 1 }
 0x530   :  { %1105 = vsyncpa [#allocation10 + $0x1], 1 }
 0x531   :  { %1106 = vsyncpa [#allocation13], 1 }
 0x532   :  { %1108 = vsyncpa [#allocation13 + $0x1], 1 }

</bundles_post_ra>
